<compile_context>
chip_gen: v5e
topology: v5e:2x2
jax: 0.10.0
libtpu: 0.0.40
codegen_flags: <defaults>
</compile_context>

<pallas_src>
import functools

import jax
import jax.numpy as jnp
from jax.experimental import pallas as pl
from jax.experimental.pallas import tpu as pltpu


def _round_up(x, m):
    return ((x + m - 1) // m) * m


def _emb_relu_dropout_kernel(ids_ref, table_ref, out_ref, *, seed, apply_dropout, p):
    """One grid step processes T tokens.

    ids_ref   : VMEM (T, 1) int32    -- token ids for this block
    table_ref : VMEM (V, D) float32  -- full embedding table (resident across grid)
    out_ref   : VMEM (T, D) float32  -- output block
    """
    T = out_ref.shape[0]
    V, D = table_ref.shape

    # --- Gather as a one-hot matmul on the MXU (small vocab) ---
    ids = ids_ref[...]                                                   # (T, 1)
    vocab_iota = jax.lax.broadcasted_iota(jnp.int32, (T, V), 1)          # (T, V)
    onehot = (ids == vocab_iota).astype(table_ref.dtype)                 # (T, V)
    emb = jnp.dot(onehot, table_ref[...], preferred_element_type=jnp.float32)  # (T, D)

    # --- ReLU ---
    act = jnp.maximum(emb, 0.0)

    # --- Dropout (training mode), stateless counter-based PRNG ---
    if apply_dropout:
        blk = pl.program_id(0).astype(jnp.uint32)
        base = jnp.uint32(seed) * jnp.uint32(0x9E3779B9) + blk * jnp.uint32(T * D)
        pos = (jax.lax.broadcasted_iota(jnp.int32, (T, D), 0) * D
               + jax.lax.broadcasted_iota(jnp.int32, (T, D), 1)).astype(jnp.uint32)
        h = pos + base
        # murmur3 32-bit finalizer: well-mixed bits from (seed, position).
        h = h ^ (h >> 16)
        h = h * jnp.uint32(0x7FEB352D)
        h = h ^ (h >> 15)
        h = h * jnp.uint32(0x846CA68B)
        h = h ^ (h >> 16)
        keep = (h & jnp.uint32(0x80000000)) == jnp.uint32(0)             # Bernoulli(0.5)
        act = jnp.where(keep, act * (1.0 / (1.0 - p)), jnp.zeros_like(act))

    out_ref[...] = act.astype(out_ref.dtype)


def embedding_forward(x, table, *, seed=0, p=0.5, training=True, block_tokens=256):
    """x: (B, S) int ids; table: (V, D) float32. Returns (B, S, D) float32."""
    B, S = x.shape
    V, D = table.shape
    N = B * S

    # Clamp ids so out-of-range tokens can never index past the table.
    ids = jnp.clip(x.reshape(N, 1).astype(jnp.int32), 0, V - 1)

    # Token block: multiple of 8 sublanes, at most block_tokens.
    T = min(block_tokens, _round_up(N, 8))
    T = _round_up(T, 8)
    N_pad = _round_up(N, T)
    if N_pad != N:
        ids = jnp.pad(ids, ((0, N_pad - N), (0, 0)))

    kernel = functools.partial(
        _emb_relu_dropout_kernel,
        seed=int(seed),
        apply_dropout=bool(training),
        p=float(p),
    )

    out = pl.pallas_call(
        kernel,
        out_shape=jax.ShapeDtypeStruct((N_pad, D), jnp.float32),
        grid=(N_pad // T,),
        in_specs=[
            pl.BlockSpec((T, 1), lambda i: (i, 0)),      # token-id block
            pl.BlockSpec((V, D), lambda i: (0, 0)),      # VMEM-resident table
        ],
        out_specs=pl.BlockSpec((T, D), lambda i: (i, 0)),
        compiler_params=pltpu.CompilerParams(
            dimension_semantics=("parallel",),           # blocks independent (v7x megacore)
        ),
    )(ids, table)

    return out[:N].reshape(B, S, D)


if __name__ == "__main__":
    key = jax.random.PRNGKey(0)
    k_tab, k_idx = jax.random.split(key)

    VOCAB = 64       # len(word_map)
    EMB_DIM = 128    # emb_dim
    B, S = 2, 8      # batch of token-id sequences

    # nn.Embedding default init: N(0, 1)
    table = jax.random.normal(k_tab, (VOCAB, EMB_DIM), dtype=jnp.float32)
    x = jax.random.randint(k_idx, (B, S), 0, VOCAB, dtype=jnp.int32)

    # Eval-mode path (no dropout): must equal relu(table[x]) exactly.
    out_eval = jax.block_until_ready(embedding_forward(x, table, training=False))
    ref_eval = jnp.maximum(table[x], 0.0)
    assert out_eval.shape == (B, S, EMB_DIM)
    assert out_eval.dtype == jnp.float32
    assert bool(jnp.allclose(out_eval, ref_eval, atol=1e-5, rtol=1e-5))

    # Training-mode path (dropout p=0.5): entries are either 0 or 2*relu(emb).
    out = jax.block_until_ready(embedding_forward(x, table, seed=0, training=True))
    assert out.shape == (B, S, EMB_DIM)
    assert out.dtype == jnp.float32
    assert bool(jnp.all(out >= 0.0))
    assert bool(jnp.all((out == 0.0) | jnp.isclose(out, 2.0 * ref_eval, atol=1e-5, rtol=1e-5)))

    print("KERNEL_OK")
</pallas_src>

<mosaic_0001>
module attributes {stable_mosaic.version = 11 : i64} {
  func.func @_emb_relu_dropout_kernel(%arg0: i32, %arg1: memref<16x1xi32, #tpu.memory_space<vmem>>, %arg2: memref<64x128xf32, #tpu.memory_space<vmem>>, %arg3: memref<16x128xf32, #tpu.memory_space<vmem>>) attributes {dimension_semantics = [#tpu.dimension_semantics<parallel>], iteration_bounds = array<i64: 1>, scalar_prefetch = 0 : i64, scratch_operands = 0 : i64, tpu.core_type = #tpu.core_type<tc>, window_params = [{transform_indices = @transform_0, window_bounds = array<i64: 16, 1>}, {pipeline_mode = #tpu.pipeline_mode<synchronous>, transform_indices = @transform_1, window_bounds = array<i64: 64, 128>}, {transform_indices = @transform_2, window_bounds = array<i64: 16, 128>}]} {
    %c0 = arith.constant 0 : index
    %c0_0 = arith.constant 0 : index
    %0 = vector.load %arg1[%c0, %c0_0] : memref<16x1xi32, #tpu.memory_space<vmem>>, vector<16x1xi32>
    %1 = tpu.iota {dimensions = array<i32: 1>} : vector<16x64xi32>
    %2 = vector.broadcast %0 : vector<16x1xi32> to vector<16x64xi32>
    %3 = arith.cmpi eq, %2, %1 : vector<16x64xi32>
    %4 = arith.extui %3 : vector<16x64xi1> to vector<16x64xi32>
    %5 = arith.sitofp %4 : vector<16x64xi32> to vector<16x64xf32>
    %c0_1 = arith.constant 0 : index
    %c0_2 = arith.constant 0 : index
    %6 = vector.load %arg2[%c0_1, %c0_2] : memref<64x128xf32, #tpu.memory_space<vmem>>, vector<64x128xf32>
    %cst = arith.constant dense<0.000000e+00> : vector<16x128xf32>
    %7 = tpu.matmul %5, %6, %cst {dimension_numbers = #tpu.dot_dimension_numbers<[1], [0], [0], [1], [0, 0, 1, 1], [], []>} : vector<16x64xf32>, vector<64x128xf32>, vector<16x128xf32> -> vector<16x128xf32>
    %cst_3 = arith.constant 0.000000e+00 : f32
    %8 = vector.broadcast %cst_3 : f32 to vector<16x128xf32>
    %9 = arith.maximumf %7, %8 : vector<16x128xf32>
    %c0_4 = arith.constant 0 : index
    %c0_5 = arith.constant 0 : index
    %10 = vector.load %arg3[%c0_4, %c0_5] : memref<16x128xf32, #tpu.memory_space<vmem>>, vector<16x128xf32>
    tpu.vector_store %arg3[%c0_4, %c0_5], %9 {strides = array<i32>} : memref<16x128xf32, #tpu.memory_space<vmem>>, vector<16x128xf32>,
    return
  }
  func.func @transform_0(%arg0: i32) -> (i32, i32) {
    %c0_i32 = arith.constant 0 : i32
    %c0_i32_0 = arith.constant 0 : i32
    return %arg0, %c0_i32 : i32, i32
  }
  func.func @transform_1(%arg0: i32) -> (i32, i32) {
    %c0_i32 = arith.constant 0 : i32
    %c0_i32_0 = arith.constant 0 : i32
    %c0_i32_1 = arith.constant 0 : i32
    return %c0_i32, %c0_i32_0 : i32, i32
  }
  func.func @transform_2(%arg0: i32) -> (i32, i32) {
    %c0_i32 = arith.constant 0 : i32
    %c0_i32_0 = arith.constant 0 : i32
    return %arg0, %c0_i32 : i32, i32
  }
}

</mosaic_0001>

<bundles_post_ra>
// kernel: tpu_custom_call.1
= control target key start
LH: loop header
LB: loop body
LE: loop exit
PB: predicated region body
PF: predicated region fallthrough
CT: control target
= control target key end

     0   :  { %7 = vsyncpa [#allocation3], 0  ;;  %s215_s0 = inlined_call_operand.vmem [shape: s32[16,1], index: 0, kind: input, shape index: {}]   ;;  %s216_s1 = inlined_call_operand.hbm [shape: f32[64,128], index: 1, kind: input, shape index: {}]   ;;  %s217_s2 = inlined_call_operand.hbm [shape: f32[16,128], index: 2, kind: output, shape index: {}]  }
   0x1   :  { %8 = vsyncpa [#allocation4], 0  ;;  %s15_s11 = sshll.u32 %s216_s1, 4  ;;  %s176_s12 = smov [#allocation2]   ;;  %s16_s11 = int_to_ptr.hbm [resolvable:$true] %s15_s11 }
   0x2   :  { %s17_s13 = sshll.u32 %s176_s12, 4  ;;  %s177_s14 = smov 128   ;;  %s18_s13 = int_to_ptr.vmem [resolvable:$true] %s17_s13 }
   0x3   :  { %s178_s15 = smov 8  }
   0x4   :  { %23 = dma.hbm_to_vmem [thread:$0]  %s16_s11, 1024, %s18_s13, [#allocation3], %s177_s14, %s177_s14, %s178_s15  }
   0x5   :  { %172 = dma.done.wait [#allocation3], 1024  }
   0x6   :  { %173 = vsyncadd [#allocation3], 4294966272  ;;  %v179_v0 = vmov 0   ;;  %v28_v1 = vld [vmem:[%s215_s0] sm:$0xff]  ;;  %v51_v2 = vld [vmem:[#allocation2 + $0x38] sm:$0xff]  ;;  %v30_v11 = vlaneseq  ;;  %vm52_vm0 = vcmask 523264  }
   0x7   :  { %123 = vset.pattern.permute.xlu0 %v179_v0  ;;  %67 = vmatpush.msra.mxu0 %v51_v2  ;;  %v50_v3 = vld [vmem:[#allocation2 + $0x30] sm:$0xff]  ;;  %v49_v4 = vld [vmem:[#allocation2 + $0x28] sm:$0xff]  ;;  %v48_v5 = vld [vmem:[#allocation2 + $0x20] sm:$0xff]  ;;  %v180_v14 = vmov 0.0   ;;  %s92_s22 = sshll.u32 %s217_s2, 4  ;;  %s93_s22 = int_to_ptr.hbm [resolvable:$true] %s92_s22 }
   0x8   :  { %33 = vperm.xlu0 %123, %v28_v1   ;;  %109 = vmatpush.msra.mxu1 %v51_v2  ;;  %v29_v6 = vld [vmem:[%s215_s0 + $0x8] sm:$0xff]  ;;  %v47_v7 = vld [vmem:[#allocation2 + $0x18] sm:$0xff]  ;;  %v46_v8 = vld [vmem:[#allocation2 + $0x10] sm:$0xff]  ;;  %v31_v12 = vand.u32 127, %v30_v11  ;;  %s181_s0 = smov [#allocation5]  }
   0x9   :  { %68 = vmatpush.msra.mxu0 %v50_v3  ;;  %v45_v9 = vld [vmem:[#allocation2 + $0x8] sm:$0xff]  ;;  %v44_v10 = vld [vmem:[#allocation2] sm:$0xff]  ;;  %s90_s19 = sshll.u32 %s181_s0, 4  ;;  %s91_s19 = int_to_ptr.vmem [resolvable:$true] %s90_s19 }
   0xa   :  { %110 = vmatpush.msra.mxu1 %v50_v3 }
   0xb   :  { %69 = vmatpush.msra.mxu0 %v49_v4 }
   0xc   :  { %111 = vmatpush.msra.mxu1 %v49_v4 }
   0xd   :  { %70 = vmatpush.msra.mxu0 %v48_v5 }
   0xe   :  { %112 = vmatpush.msra.mxu1 %v48_v5 }
   0xf   :  { %71 = vmatpush.msra.mxu0 %v47_v7 }
  0x10   :  { %36 = vperm.xlu0 %123, %v29_v6   ;;  %113 = vmatpush.msra.mxu1 %v47_v7 }
  0x11   :  { %72 = vmatpush.msra.mxu0 %v46_v8 }
  0x12   :  { %114 = vmatpush.msra.mxu1 %v46_v8 }
  0x13   :  { %73 = vmatpush.msra.mxu0 %v45_v9 }
  0x14   :  { %115 = vmatpush.msra.mxu1 %v45_v9 }
  0x15   :  { %74 = vmatpush.msra.mxu0 %v44_v10 }
  0x16   :  { %116 = vmatpush.msra.mxu1 %v44_v10 }
  0x7a   :  { %v34_v13 = vpop.permute.xlu0 %33 }
  0x7b   :  { %vm38_vm1 = vcmp.eq.s32.totalorder %v34_v13, %v31_v12 }
  0x7c   :  { %v105_v15 = vsel %vm38_vm1, 1.0, %v180_v14 }
  0x7d   :  { %107 = vmatmul.msk.f32.vlgmr.msra.gmra.mxu0 %vm52_vm0, %v105_v15 }
  0x82   :  { %v37_v16 = vpop.permute.xlu0 %36 }
  0x83   :  { %vm39_vm2 = vcmp.eq.s32.totalorder %v37_v16, %v31_v12 }
  0x84   :  { %v106_v17 = vsel %vm39_vm2, 1.0, %v180_v14 }
  0x85   :  { %108 = vmatmul.msk.f32.vlgmr.msra.gmra.mxu1 %vm52_vm0, %v106_v17 }
  0xfa   :  { %v76_v18 = vpop.f32.mrf.mxu0 }
  0xfb   :  { %v82_v19 = vmax.f32 %v76_v18, 0.0 }
  0xfd   :  { %84 = vst [vmem:[#allocation5] sm:$0xff] %v82_v19 }
 0x102   :  { %v79_v20 = vpop.f32.mrf.mxu1 }
 0x103   :  { %v83_v21 = vmax.f32 %v79_v20, 0.0 }
 0x105   :  { %85 = vst [vmem:[#allocation5 + $0x8] sm:$0xff] %v83_v21 }
 0x106   :  { %98 = dma.vmem_to_hbm [thread:$0]  %s91_s19, 256, %s93_s22, [#allocation4], %s177_s14, %s177_s14, %s178_s15  }
 0x107   :  { %174 = dma.done.wait [#allocation4], 256  }
 0x108   :  { %175 = vsyncadd [#allocation4], 4294967040 }
 0x109   :  { %103 = vsyncpa [#allocation3], 1 }
 0x10a   :  { %104 = vsyncpa [#allocation4], 1 }

</bundles_post_ra>
